<compile_context>
chip_gen: v6e
topology: v6e:2x2x1
jax: 0.10.0
libtpu: 0.0.40
codegen_flags: <defaults>
</compile_context>

<pallas_src>
import math

import jax
import jax.numpy as jnp
from jax import lax
from jax.experimental import pallas as pl
from jax.experimental.pallas import tpu as pltpu


def _make_kernel(kernel_type, mxu_dtype):
    use_highest = jnp.dtype(mxu_dtype) == jnp.dtype(jnp.float32)
    precision = lax.Precision.HIGHEST if use_highest else lax.Precision.DEFAULT

    def kernel_fn(p_ref, wmu_ref, wls_ref, weps_ref, scale_ref, out_ref):
        scale = scale_ref[0]                                    # scalar from 1-D SMEM

        # Reparameterized conv weight for this MC sample; grid step == m, so it
        # is computed exactly once per sample (no cache / pl.when needed).
        wq = wmu_ref[...] + jnp.exp(wls_ref[...] * 0.5) * weps_ref[0]    # (O, KIp) f32
        if kernel_type == 'arccos':
            # relu(s*z) == s*relu(z) for s > 0: fold the prefactor into the
            # weight, dropping the per-element post-matmul multiply.
            wq = wq * scale

        # Single im2col MXU matmul: (O, K*I) @ (K*I, bz*L_out).
        acc = jnp.dot(wq.astype(mxu_dtype), p_ref[0],
                      preferred_element_type=jnp.float32,
                      precision=precision)                      # (O, Npad) f32

        if kernel_type == 'rbf':
            out_ref[0, 0] = jnp.cos(acc) * scale
            out_ref[0, 1] = jnp.sin(acc) * scale
        else:  # 'arccos'
            out_ref[0, 0] = jnp.maximum(acc, 0.0)

    return kernel_fn


def _im2col(x, *, F0, mc, in_channels, kernel_size, stride, padding):
    """Build per-MC-sample im2col patches.

    Returns P of shape (mc, I*K, bz*L_out) with
      P[m, i*K + k, b*L_out + t] = x_src(m, b)[i, stride*t + k - padding]
    where for F0=True  x_src(m, b) = original sample (b*mc + m) % bz  (PyTorch
    repeat+reshape semantics) and for F0=False it is channel group m of batch b.
    """
    I, K = in_channels, kernel_size
    if F0:
        bz, ic, l = x.shape
        assert ic == I
        xg = x[:, None, :, :]                                   # (bz, 1, I, l)
    else:
        bz, c, l = x.shape
        assert c == mc * I
        xg = x.reshape(bz, mc, I, l)                            # (bz, mc, I, l)

    Lp = l + 2 * padding
    L_out = (Lp - K) // stride + 1
    xp = jnp.pad(xg, ((0, 0), (0, 0), (0, 0), (padding, padding)))
    t_idx = stride * jnp.arange(L_out)[:, None] + jnp.arange(K)[None, :]   # (L_out, K)
    # (bz, G, I, L_out, K) -> (bz, G, I, K, L_out) -> (bz, G, I*K, L_out)
    pat = xp[..., t_idx].transpose(0, 1, 2, 4, 3).reshape(bz, xg.shape[1], I * K, L_out)

    if F0:
        pat = pat[:, 0]                                         # (bz, I*K, L_out)
        perm = (jnp.arange(bz)[None, :] * mc + jnp.arange(mc)[:, None]) % bz   # (mc, bz)
        P = pat[perm]                                           # (mc, bz, I*K, L_out)
    else:
        P = pat.transpose(1, 0, 2, 3)                           # (mc, bz, I*K, L_out)

    # columns ordered n = b*L_out + t  (batch folded onto the lane axis)
    P = P.transpose(0, 2, 1, 3).reshape(mc, I * K, bz * L_out)
    return P, bz, L_out


def conv_rff_forward(x, params, *, kernel_type, F0, mc, in_channels, out_channels,
                     kernel_size, stride, padding, mxu_dtype=jnp.float32):
    omega_mu, omega_logsigma, omega_eps, log_scale = params
    I, O, K = in_channels, out_channels, kernel_size
    ks = 2 if kernel_type == 'rbf' else 1

    P, bz, L_out = _im2col(x, F0=F0, mc=mc, in_channels=I,
                           kernel_size=K, stride=stride, padding=padding)
    KI = I * K
    KIp = -(-KI // 16) * 16                 # pad contraction dim (bf16 sublane tile)
    N = bz * L_out
    Npad = -(-N // 128) * 128               # pad lane axis -> unmasked, lane-dense stores

    P = jnp.pad(P, ((0, 0), (0, KIp - KI), (0, Npad - N))).astype(mxu_dtype)

    # torch's omega_q.view(mc*O, I, K) is a row-major reinterpretation of the
    # (I*K, O) params; flattening taps gives exactly reshape(O, I*K).  The
    # elementwise reparam commutes with the reshape, so it is done in-kernel in
    # this layout.  Padded columns are zero (mu=0, eps=0) -> contribute nothing.
    wmu = jnp.pad(omega_mu.reshape(O, KI).astype(jnp.float32), ((0, 0), (0, KIp - KI)))
    wls = jnp.pad(omega_logsigma.reshape(O, KI).astype(jnp.float32), ((0, 0), (0, KIp - KI)))
    weps = jnp.pad(omega_eps.reshape(mc, O, KI).astype(jnp.float32),
                   ((0, 0), (0, 0), (0, KIp - KI)))

    n_rf = O * L_out
    scale = (ks * jnp.exp(log_scale.astype(jnp.float32) * 0.5)
             / math.sqrt(n_rf)).reshape(1)                        # 1-D SMEM scalar

    p_bytes = mc * KIp * Npad * jnp.dtype(mxu_dtype).itemsize
    w_bytes = (2 + mc) * O * KIp * 4
    o_bytes = mc * ks * O * Npad * 4
    cost = pl.CostEstimate(
        flops=2 * mc * O * KIp * Npad + 3 * mc * O * KIp + 2 * mc * ks * O * Npad,
        transcendentals=mc * O * KIp + (2 * mc * O * Npad if kernel_type == 'rbf' else 0),
        bytes_accessed=p_bytes + w_bytes + o_bytes + 4)

    out = pl.pallas_call(
        _make_kernel(kernel_type, mxu_dtype),
        out_shape=jax.ShapeDtypeStruct((mc, ks, O, Npad), jnp.float32),
        grid_spec=pltpu.PrefetchScalarGridSpec(
            num_scalar_prefetch=0,
            grid=(mc,),
            in_specs=[
                pl.BlockSpec((1, KIp, Npad), lambda m: (m, 0, 0)),     # im2col patches
                pl.BlockSpec((O, KIp), lambda m: (0, 0)),              # omega_mu (grid-invariant)
                pl.BlockSpec((O, KIp), lambda m: (0, 0)),              # omega_logsigma
                pl.BlockSpec((1, O, KIp), lambda m: (m, 0, 0)),        # omega_eps[m]
                pl.BlockSpec(memory_space=pltpu.MemorySpace.SMEM),     # 1-D scalar prefactor
            ],
            out_specs=pl.BlockSpec((1, ks, O, Npad), lambda m: (m, 0, 0, 0)),
        ),
        compiler_params=pltpu.CompilerParams(
            dimension_semantics=("parallel",)),
        cost_estimate=cost,
    )(P, wmu, wls, weps, scale)

    # Layout plumbing back to torch's phi.view(bz, ks*mc*O, L_out):
    # channel = ks*(m*O + o) + h  with h selecting cos/sin for rbf.
    out = out[..., :N].reshape(mc, ks, O, bz, L_out)
    out = out.transpose(3, 0, 2, 1, 4).reshape(bz, ks * mc * O, L_out)
    return out


def reference_forward(x, params, *, kernel_type, F0, mc, in_channels, out_channels,
                      kernel_size, stride, padding):
    """Pure-JAX mirror of the PyTorch ConvRFFLayer.forward semantics."""
    omega_mu, omega_logsigma, omega_eps, log_scale = params
    bz = x.shape[0]
    if F0:
        xr = jnp.tile(x, (mc, 1, 1, 1))                   # (mc, bz, I, l) -- prepends dim
        l = xr.shape[-1]
        xr = xr.reshape(bz, mc * in_channels, l)
    else:
        xr = x

    omega_q = omega_mu + jnp.exp(omega_logsigma * 0.5) * omega_eps      # (mc, I*K, O)
    W = omega_q.reshape(mc * out_channels, in_channels, kernel_size)    # torch .view

    xp = jnp.pad(xr, ((0, 0), (0, 0), (padding, padding)))
    Lp = xp.shape[-1]
    L_out = (Lp - kernel_size) // stride + 1
    t_idx = stride * jnp.arange(L_out)[:, None] + jnp.arange(kernel_size)[None, :]
    patches = xp[:, :, t_idx]                                           # (bz, mc*I, L_out, K)
    patches = patches.reshape(bz, mc, in_channels, L_out, kernel_size)
    Wg = W.reshape(mc, out_channels, in_channels, kernel_size)
    phi_half = jnp.einsum('bgilk,goik->bgol', patches, Wg,
                          precision=lax.Precision.HIGHEST)
    phi_half = phi_half.reshape(bz, mc * out_channels, L_out)

    n_rf = out_channels * L_out
    scale = jnp.exp(log_scale * 0.5)
    if kernel_type == 'rbf':
        phi = jnp.concatenate([jnp.cos(phi_half), jnp.sin(phi_half)], axis=-1)
        ksc = 2
    else:
        phi = jnp.maximum(phi_half, 0.0)
        ksc = 1
    phi = phi * (ksc * scale / jnp.sqrt(jnp.float32(n_rf)))
    return phi.reshape(bz, ksc * mc * out_channels, L_out)


if __name__ == "__main__":
    mc = 4                        # even -> splits cleanly across v7x's 2 TensorCores
    bz = 2
    in_channels, out_channels = 4, 16
    kernel_size, stride, padding = 3, 2, 1
    l = 128                       # L_out = 64 -> bz*L_out = 128 (lane-dense, no padding)

    key = jax.random.PRNGKey(0)
    kx, k1, k2, k3 = jax.random.split(key, 4)
    omega_mu = 0.3 * jax.random.normal(
        k1, (in_channels * kernel_size, out_channels), jnp.float32)
    omega_logsigma = 0.2 * jax.random.normal(
        k2, (in_channels * kernel_size, out_channels), jnp.float32)
    omega_eps = jax.random.normal(
        k3, (mc, in_channels * kernel_size, out_channels), jnp.float32)
    log_scale = jnp.ones((1,), jnp.float32) * 0.5
    params = (omega_mu, omega_logsigma, omega_eps, log_scale)

    L_out = (l + 2 * padding - kernel_size) // stride + 1

    # Strict f32 checks over both kernels and both F0 modes.
    for F0 in (True, False):
        chan = in_channels if F0 else mc * in_channels
        x = jax.random.normal(kx, (bz, chan, l), jnp.float32)
        for kernel_type in ('rbf', 'arccos'):
            out = conv_rff_forward(x, params, kernel_type=kernel_type, F0=F0, mc=mc,
                                   in_channels=in_channels, out_channels=out_channels,
                                   kernel_size=kernel_size, stride=stride, padding=padding,
                                   mxu_dtype=jnp.float32)
            out = jax.block_until_ready(out)
            ref = reference_forward(x, params, kernel_type=kernel_type, F0=F0, mc=mc,
                                    in_channels=in_channels, out_channels=out_channels,
                                    kernel_size=kernel_size, stride=stride, padding=padding)
            ksc = 2 if kernel_type == 'rbf' else 1
            assert out.shape == (bz, ksc * mc * out_channels, L_out), out.shape
            err = float(jnp.max(jnp.abs(out - ref)))
            assert err < 2e-5, f"F0={F0} {kernel_type}: max abs err {err}"

    # bf16-MXU path (v6e/v7x rate; post-matmul math stays f32) -- loose tolerance.
    x = jax.random.normal(kx, (bz, in_channels, l), jnp.float32)
    for kernel_type in ('rbf', 'arccos'):
        out = conv_rff_forward(x, params, kernel_type=kernel_type, F0=True, mc=mc,
                               in_channels=in_channels, out_channels=out_channels,
                               kernel_size=kernel_size, stride=stride, padding=padding,
                               mxu_dtype=jnp.bfloat16)
        out = jax.block_until_ready(out)
        ref = reference_forward(x, params, kernel_type=kernel_type, F0=True, mc=mc,
                                in_channels=in_channels, out_channels=out_channels,
                                kernel_size=kernel_size, stride=stride, padding=padding)
        err = float(jnp.max(jnp.abs(out - ref)))
        assert err < 3e-2, f"bf16 {kernel_type}: max abs err {err}"

    print("KERNEL_OK")
</pallas_src>

<mosaic_0001>
module attributes {stable_mosaic.version = 11 : i64} {
  func.func @kernel_fn(%arg0: i32, %arg1: memref<1x16x128xf32, #tpu.memory_space<vmem>>, %arg2: memref<16x16xf32, #tpu.memory_space<vmem>>, %arg3: memref<16x16xf32, #tpu.memory_space<vmem>>, %arg4: memref<1x16x16xf32, #tpu.memory_space<vmem>>, %arg5: memref<1xf32, #tpu.memory_space<smem>>, %arg6: memref<1x2x16x128xf32, #tpu.memory_space<vmem>>) attributes {dimension_semantics = [#tpu.dimension_semantics<parallel>], iteration_bounds = array<i64: 4>, scalar_prefetch = 0 : i64, scratch_operands = 0 : i64, tpu.core_type = #tpu.core_type<tc>, window_params = [{transform_indices = @transform_0, window_bounds = array<i64: 1, 16, 128>}, {pipeline_mode = #tpu.pipeline_mode<synchronous>, transform_indices = @transform_1, window_bounds = array<i64: 16, 16>}, {pipeline_mode = #tpu.pipeline_mode<synchronous>, transform_indices = @transform_2, window_bounds = array<i64: 16, 16>}, {transform_indices = @transform_3, window_bounds = array<i64: 1, 16, 16>}, {transform_indices = @transform_4, window_bounds = array<i64: 1>}, {transform_indices = @transform_5, window_bounds = array<i64: 1, 2, 16, 128>}]} {
    %c0 = arith.constant 0 : index
    %0 = memref.load %arg5[%c0] : memref<1xf32, #tpu.memory_space<smem>>
    %c0_0 = arith.constant 0 : index
    %c0_1 = arith.constant 0 : index
    %1 = vector.load %arg2[%c0_0, %c0_1] : memref<16x16xf32, #tpu.memory_space<vmem>>, vector<16x16xf32>
    %c0_2 = arith.constant 0 : index
    %c0_3 = arith.constant 0 : index
    %2 = vector.load %arg3[%c0_2, %c0_3] : memref<16x16xf32, #tpu.memory_space<vmem>>, vector<16x16xf32>
    %cst = arith.constant 5.000000e-01 : f32
    %3 = vector.broadcast %cst : f32 to vector<16x16xf32>
    %4 = arith.mulf %2, %3 : vector<16x16xf32>
    %5 = math.exp %4 : vector<16x16xf32>
    %c0_4 = arith.constant 0 : index
    %c0_5 = arith.constant 0 : index
    %c0_6 = arith.constant 0 : index
    %6 = vector.load %arg4[%c0_4, %c0_5, %c0_6] : memref<1x16x16xf32, #tpu.memory_space<vmem>>, vector<1x16x16xf32>
    %7 = vector.shape_cast %6 : vector<1x16x16xf32> to vector<16x16xf32>
    %8 = arith.mulf %5, %7 : vector<16x16xf32>
    %9 = arith.addf %1, %8 : vector<16x16xf32>
    %c0_7 = arith.constant 0 : index
    %c0_8 = arith.constant 0 : index
    %c0_9 = arith.constant 0 : index
    %10 = vector.load %arg1[%c0_7, %c0_8, %c0_9] : memref<1x16x128xf32, #tpu.memory_space<vmem>>, vector<1x16x128xf32>
    %11 = vector.shape_cast %10 : vector<1x16x128xf32> to vector<16x128xf32>
    %cst_10 = arith.constant dense<0.000000e+00> : vector<16x128xf32>
    %12 = tpu.matmul %9, %11, %cst_10 {dimension_numbers = #tpu.dot_dimension_numbers<[1], [0], [0], [1], [0, 0, 1, 1], [], []>, precision = #tpu.contract_precision<fp32>} : vector<16x16xf32>, vector<16x128xf32>, vector<16x128xf32> -> vector<16x128xf32>
    %13 = math.cos %12 : vector<16x128xf32>
    %14 = vector.broadcast %0 : f32 to vector<16x128xf32>
    %15 = arith.mulf %13, %14 : vector<16x128xf32>
    %c0_11 = arith.constant 0 : index
    %c0_12 = arith.constant 0 : index
    %c0_13 = arith.constant 0 : index
    %c0_14 = arith.constant 0 : index
    %16 = vector.load %arg6[%c0_11, %c0_12, %c0_13, %c0_14] : memref<1x2x16x128xf32, #tpu.memory_space<vmem>>, vector<1x1x16x128xf32>
    %17 = vector.shape_cast %16 : vector<1x1x16x128xf32> to vector<16x128xf32>
    %18 = vector.shape_cast %15 : vector<16x128xf32> to vector<1x1x16x128xf32>
    tpu.vector_store %arg6[%c0_11, %c0_12, %c0_13, %c0_14], %18 {strides = array<i32>} : memref<1x2x16x128xf32, #tpu.memory_space<vmem>>, vector<1x1x16x128xf32>,
    %19 = math.sin %12 : vector<16x128xf32>
    %20 = vector.broadcast %0 : f32 to vector<16x128xf32>
    %21 = arith.mulf %19, %20 : vector<16x128xf32>
    %c0_15 = arith.constant 0 : index
    %c1 = arith.constant 1 : index
    %c0_16 = arith.constant 0 : index
    %c0_17 = arith.constant 0 : index
    %22 = vector.load %arg6[%c0_15, %c1, %c0_16, %c0_17] : memref<1x2x16x128xf32, #tpu.memory_space<vmem>>, vector<1x1x16x128xf32>
    %23 = vector.shape_cast %22 : vector<1x1x16x128xf32> to vector<16x128xf32>
    %24 = vector.shape_cast %21 : vector<16x128xf32> to vector<1x1x16x128xf32>
    tpu.vector_store %arg6[%c0_15, %c1, %c0_16, %c0_17], %24 {strides = array<i32>} : memref<1x2x16x128xf32, #tpu.memory_space<vmem>>, vector<1x1x16x128xf32>,
    return
  }
  func.func @transform_0(%arg0: i32) -> (i32, i32, i32) {
    %c0_i32 = arith.constant 0 : i32
    %c0_i32_0 = arith.constant 0 : i32
    %c0_i32_1 = arith.constant 0 : i32
    return %arg0, %c0_i32, %c0_i32_0 : i32, i32, i32
  }
  func.func @transform_1(%arg0: i32) -> (i32, i32) {
    %c0_i32 = arith.constant 0 : i32
    %c0_i32_0 = arith.constant 0 : i32
    %c0_i32_1 = arith.constant 0 : i32
    return %c0_i32, %c0_i32_0 : i32, i32
  }
  func.func @transform_2(%arg0: i32) -> (i32, i32) {
    %c0_i32 = arith.constant 0 : i32
    %c0_i32_0 = arith.constant 0 : i32
    %c0_i32_1 = arith.constant 0 : i32
    return %c0_i32, %c0_i32_0 : i32, i32
  }
  func.func @transform_3(%arg0: i32) -> (i32, i32, i32) {
    %c0_i32 = arith.constant 0 : i32
    %c0_i32_0 = arith.constant 0 : i32
    %c0_i32_1 = arith.constant 0 : i32
    return %arg0, %c0_i32, %c0_i32_0 : i32, i32, i32
  }
  func.func @transform_4(%arg0: i32) -> i32 {
    %c0_i32 = arith.constant 0 : i32
    %c0_i32_0 = arith.constant 0 : i32
    return %c0_i32 : i32
  }
  func.func @transform_5(%arg0: i32) -> (i32, i32, i32, i32) {
    %c0_i32 = arith.constant 0 : i32
    %c0_i32_0 = arith.constant 0 : i32
    %c0_i32_1 = arith.constant 0 : i32
    %c0_i32_2 = arith.constant 0 : i32
    return %arg0, %c0_i32, %c0_i32_0, %c0_i32_1 : i32, i32, i32, i32
  }
}

</mosaic_0001>

<bundles_post_ra>
// kernel: tpu_custom_call.1
= control target key start
LH: loop header
LB: loop body
LE: loop exit
PB: predicated region body
PF: predicated region fallthrough
CT: control target
= control target key end

     0   :  { %s2154_s0 = inlined_call_operand.hbm [shape: f32[4,16,128], index: 0, kind: input, shape index: {}]   ;;  %s2155_s1 = inlined_call_operand.hbm [shape: f32[16,16], index: 1, kind: input, shape index: {}]   ;;  %s2156_s2 = inlined_call_operand.hbm [shape: f32[16,16], index: 2, kind: input, shape index: {}]   ;;  %s2157_s3 = inlined_call_operand.hbm [shape: f32[4,16,16], index: 3, kind: input, shape index: {}]   ;;  %s2158_s4 = inlined_call_operand.<no memory space> [shape: f32[1], index: 4, kind: input, shape index: {}]   ;;  %s2159_s5 = inlined_call_operand.hbm [shape: f32[4,2,16,128], index: 5, kind: output, shape index: {}]  }
   0x1   :  { %2168 = sst [smem:[#allocation16_spill]] %s2154_s0 }
   0x2   :  { %2169 = sst [smem:[#allocation17_spill]] %s2155_s1 }
   0x3   :  { %2170 = sst [smem:[#allocation18_spill]] %s2156_s2 }
   0x4   :  { %10 = sst [smem:[#allocation2]] %s2158_s4 }
   0x5   :  { %11 = vsyncpa [#allocation4], 0 }
   0x6   :  { %13 = vsyncpa [#allocation4 + $0x1], 0 }
   0x7   :  { %14 = vsyncpa [#allocation7], 0 }
   0x8   :  { %15 = vsyncpa [#allocation10], 0 }
   0x9   :  { %17 = vsyncpa [#allocation10 + $0x1], 0 }
   0xa   :  { %18 = vsyncpa [#allocation5], 0 }
   0xb   :  { %20 = vsyncpa [#allocation5 + $0x1], 0  ;;  %s1835_s20 = smov 0   ;;  %s1837_s21 = smov 0  }
   0xc   :  { %s1839_s22 = smov 0   ;;  %s1841_s23 = smov 0  }
   0xd LB: > { %s1856_s4 = sadd.s32 4294967295, %s1785_s23   ;;  %s1394_s24 = sadd.s32 4294967294, %s1785_s23   ;;  %s1785_s23 = sphi %s1841_s23, %s2191_s23   ;;  %s1781_s22 = sphi %s1839_s22, %s2190_s22   ;;  %s1777_s21 = sphi %s1837_s21, %s2189_s21   ;;  %s1773_s20 = sphi %s1835_s20, %s2188_s20  }
   0xe   : > { %p46_p0 = scmp.ne.s32.totalorder %s1777_s21, %s1773_s20  ;;  %p2165_p1 = scmp.eq.s32.totalorder %s1856_s4, 0 }
   0xf   : > { %p159_p2 = scmp.eq.s32.totalorder %s1856_s4, 3  ;;  %p165_p3 = scmp.eq.s32.totalorder %s1394_s24, 3 }
  0x10   : > { %p1865_p4 = por %p2165_p1, %p46_p0  ;;  %p1395_p5 = scmp.ge.s32.totalorder %s1785_s23, 1 }
  0x11   : > { %p1870_p6 = por %p165_p3, %p46_p0  ;;  %p172_p7 = scmp.lt.s32.totalorder %s1785_s23, 5 }
  0x12   : > { %s2171_s25 = scalar_select %p1865_p4, 1, 0 }
  0x13   : > { %s2172_s26 = scalar_select %p1870_p6, 1, 0 }
  0x14   : > { %p1875_p8 = pnand %p1395_p5, %p172_p7  ;;  %s1787_s28 = smov [#allocation6]  }
  0x15   : > { %s184_s29 = sshll.u32 %s1787_s28, 4  ;;  %s1788_s6 = smov [#allocation8]   ;;  %s185_s29 = int_to_ptr.vmem [resolvable:$true] %s184_s29 }
  0x16   : > { %p1525_p9 = pneg %p1875_p8  ;;  %s197_s7 = sshll.u32 %s1788_s6, 4  ;;  %s198_s7 = int_to_ptr.vmem [resolvable:$true] %s197_s7 }
  0x17   : > { %s1616_s8 = scalar_lea.vmem %s185_s29, 256  ;;  %p1624_p3 = scmp.lt.s32.totalorder %s185_s29, %s185_s29 }
  0x18   : > { %p1883_p10 = pnand %p1525_p9, %p2165_p1  ;;  %p1617_p12 = scmp.ne.s32.totalorder %s185_s29, %s1616_s8 }
  0x19   : > { %p1625_p5 = scmp.lt.s32.totalorder %s1616_s8, %s1616_s8 }
  0x1a   : > { %p1607_p11 = pneg %p1883_p10 }
  0x1b   : > { %p1626_p7 = por %p1625_p5, %p1624_p3 }
  0x1c   : > { %p1619_p13 = pnand %p1617_p12, %p1607_p11 }
  0x1e   : > { %p1620_p0 = pneg %p1619_p13 }
  0x20   : > { %p1627_p9 = pnand %p1626_p7, %p1620_p0 }
  0x22   : > { %1630 = shalt.err (!%p1627_p9)
}
  0x23   : > { %s2161_s9 = smov 128   ;;  %s2163_s10 = smov 8  }
  0x24   : > { %s2175_s1 = sld [smem:[#allocation17_spill]]  ;;  %s1642_s13 = scalar_lea.vmem %s198_s7, 256 }
  0x25   : > { %p1643_p12 = scmp.ne.s32.totalorder %s198_s7, %s1642_s13  ;;  %p1650_p0 = scmp.lt.s32.totalorder %s198_s7, %s198_s7 }
  0x26   : > { %p1651_p5 = scmp.lt.s32.totalorder %s1642_s13, %s1642_s13 }
  0x27   : > { %p1645_p13 = pnand %p1643_p12, %p1607_p11 }
  0x28   : > { %p1652_p7 = por %p1651_p5, %p1650_p0 }
  0x29   : > { %p1646_p3 = pneg %p1645_p13 }
  0x2a   : > { %1528 = dma.hbm_to_vmem [thread:$0]  (!%p1883_p10), %s2175_s1, 256, %s185_s29, [#allocation7], %s2161_s9, %s2161_s9, %s2163_s10  }
  0x2b   : > { %p1653_p9 = pnand %p1652_p7, %p1646_p3 }
  0x2d   : > { %1656 = shalt.err (!%p1653_p9)
}
  0x2e   : > { %s2176_s2 = sld [smem:[#allocation18_spill]]  ;;  %s1912_s16 = sadd.s32 1, %s1785_s23  }
  0x2f   : > { %s33_s17 = sadd.s32 1, %s1781_s22  ;;  %s30_s18 = ssub.s32 %s1785_s23, %s1912_s16 }
  0x30   : > { %p40_p11 = scmp.ne.s32.totalorder %s1781_s22, %s1777_s21  ;;  %p31_p12 = scmp.eq.s32.totalorder %s30_s18, 0 }
  0x31   : > { %p41_p13 = scmp.eq.s32.totalorder %s1785_s23, 0  ;;  %p1545_p0 = scmp.lt.s32.totalorder %s1785_s23, 4 }
  0x32   : > { %p1922_p3 = por %p159_p2, %p40_p11  ;;  %s1931_s28 = sand.u32 1, %s1781_s22  }
  0x33   : > { %s1928_s24 = scalar_select %p31_p12, %s1781_s22, %s33_s17  }
  0x34   : > { %1531 = dma.hbm_to_vmem [thread:$0]  (!%p1883_p10), %s2176_s2, 256, %s198_s7, [#allocation7], %s2161_s9, %s2161_s9, %s2163_s10  }
  0x35   : > { %s2177_s19 = scalar_select %p1922_p3, 1, 0 }
  0x36   : > { %p42_p5 = por %p41_p13, %p40_p11  ;;  %s2160_s29 = sshll.u32 %s1931_s28, 4 }
  0x37   : > { %s1434_s30 = sshll.u32 %s1785_s23, 8  ;;  %s2178_s0 = sld [smem:[#allocation16_spill]] }
  0x38   : > { %s218_s11 = scalar_lea.vmem [#allocation3], %s2160_s29  ;;  %p1944_p2 = pnand %p1545_p0, %p42_p5 }
  0x39   : > { %s225_s12 = sshll.u32 %s218_s11, 4  ;;  %s1951_s17 = scalar_lea.hbm %s2157_s3, %s1434_s30  ;;  %s1942_s12 = int_to_ptr.vmem [resolvable:$true] %s225_s12 }
  0x3a   : > { %s215_s18 = scalar_lea.sflag [#allocation4], %s1931_s28  ;;  %p1659_p7 = pneg %p1944_p2 }
  0x3d   : > { %s1938_s8 = scalar_lea.hbm %s2178_s0, %s1434_s30  ;;  %s1662_s29 = scalar_lea.hbm %s2178_s0, 1024 }
  0x3e   : > { %s1657_s6 = scalar_lea.hbm %s1938_s8, 256  ;;  %p1663_p12 = scmp.lt.s32.totalorder %s1938_s8, %s2178_s0 }
  0x3f   : > { %p1658_p10 = scmp.ne.s32.totalorder %s1938_s8, %s1657_s6  ;;  %p1664_p13 = scmp.lt.s32.totalorder %s1662_s29, %s1657_s6 }
  0x41   : > { %p1660_p9 = pnand %p1659_p7, %p1658_p10  ;;  %p1665_p0 = por %p1664_p13, %p1663_p12 }
  0x43   : > { %p1661_p11 = pneg %p1660_p9 }
  0x45   : > { %p1666_p5 = pnand %p1665_p0, %p1661_p11 }
  0x47   : > { %1669 = shalt.err (!%p1666_p5)
}
  0x48   : > { %s1670_s30 = scalar_lea.vmem %s1942_s12, 256  ;;  %s1791_s14 = smov [#allocation3]  }
  0x49   : > { %p1671_p1 = scmp.ne.s32.totalorder %s1942_s12, %s1670_s30  ;;  %s1675_s15 = sshll.u32 %s1791_s14, 4  ;;  %s1676_s15 = int_to_ptr.vmem [resolvable:$false] %s1675_s15 }
  0x4a   : > { %s1677_s7 = scalar_lea.vmem %s1676_s15, 512  ;;  %p1678_p6 = scmp.lt.s32.totalorder %s1942_s12, %s1676_s15 }
  0x4b   : > { %p1673_p10 = pnand %p1671_p1, %p1659_p7  ;;  %p1679_p3 = scmp.lt.s32.totalorder %s1677_s7, %s1670_s30 }
  0x4d   : > { %p1674_p9 = pneg %p1673_p10  ;;  %p1680_p4 = por %p1679_p3, %p1678_p6 }
  0x4f   : > { %p1681_p12 = pnand %p1680_p4, %p1674_p9 }
  0x51   : > { %1684 = shalt.err (!%p1681_p12)
}
  0x52   : > { %s2180_s9 = smov 8   ;;  %s2181_s10 = smov 128  }
  0x53   : > { %1535 = dma.hbm_to_vmem [thread:$0]  (!%p1944_p2), %s1938_s8, 256, %s1942_s12, %s215_s18, %s2181_s10, %s2181_s10, %s2180_s9  }
  0x54   : > { %s2182_s29 = sshll.u32 %s1931_s28, 4  ;;  %s236_s30 = scalar_lea.sflag [#allocation10], %s1931_s28 }
  0x55   : > { %s239_s6 = scalar_lea.vmem [#allocation9], %s2182_s29  ;;  %s1685_s14 = scalar_lea.hbm %s1951_s17, 256 }
  0x56   : > { %s246_s11 = sshll.u32 %s239_s6, 4  ;;  %p1686_p1 = scmp.ne.s32.totalorder %s1951_s17, %s1685_s14  ;;  %s1985_s11 = int_to_ptr.vmem [resolvable:$true] %s246_s11 }
  0x57   : > { %s1690_s0 = scalar_lea.hbm %s2157_s3, 1024  ;;  %p1691_p3 = scmp.lt.s32.totalorder %s1951_s17, %s2157_s3 }
  0x58   : > { %p1688_p4 = pnand %p1686_p1, %p1659_p7  ;;  %p1692_p11 = scmp.lt.s32.totalorder %s1690_s0, %s1685_s14 }
  0x5a   : > { %p1689_p6 = pneg %p1688_p4  ;;  %p1693_p13 = por %p1692_p11, %p1691_p3 }
  0x5c   : > { %p1694_p0 = pnand %p1693_p13, %p1689_p6 }
  0x5e   : > { %1697 = shalt.err (!%p1694_p0)
}
  0x5f   : > { %s1698_s28 = scalar_lea.vmem %s1985_s11, 256  ;;  %s1792_s8 = smov [#allocation9]  }
  0x60   : > { %p1699_p5 = scmp.ne.s32.totalorder %s1985_s11, %s1698_s28  ;;  %s1703_s12 = sshll.u32 %s1792_s8, 4  ;;  %s1704_s12 = int_to_ptr.vmem [resolvable:$false] %s1703_s12 }
  0x61   : > { %s1705_s18 = scalar_lea.vmem %s1704_s12, 512  ;;  %p1706_p12 = scmp.lt.s32.totalorder %s1985_s11, %s1704_s12 }
  0x62   : > { %p1701_p10 = pnand %p1699_p5, %p1659_p7  ;;  %p1707_p1 = scmp.lt.s32.totalorder %s1705_s18, %s1698_s28 }
  0x64   : > { %p1702_p9 = pneg %p1701_p10  ;;  %p1708_p4 = por %p1707_p1, %p1706_p12 }
  0x66   : > { %p1709_p3 = pnand %p1708_p4, %p1702_p9 }
  0x68   : > { %1712 = shalt.err (!%p1709_p3)
}
  0x69   : > { %1538 = dma.hbm_to_vmem [thread:$0]  (!%p1944_p2), %s1951_s17, 256, %s1985_s11, %s236_s30, %s2181_s10, %s2181_s10, %s2180_s9  }
  0x6a   : > { %258 = sbr.rel (%p1875_p8) target bundleno = 467 (0x1d3), region = 40  ;;  %s2016_s0 = sand.u32 (!%p1875_p8), 1, %s1777_s21  }
  0x6b   : > { %s1406_s1 = sshll.u32 (!%p1875_p8), %s2016_s0, 4  ;;  %s261_s2 = scalar_lea.sflag (!%p1875_p8), [#allocation4], %s2016_s0 }
  0x6c   : > { %s264_s29 = scalar_lea.vmem (!%p1875_p8), [#allocation3], %s1406_s1  ;;  %p2183_p7 = scmp.ne.s32.totalorder (!%p1875_p8), %s2171_s25, 0 }
  0x6f   : > { %1756 = dma.done.wait (%p2183_p7), %s261_s2, 256  }
  0x70   : > { %1758 = vsyncadd (%p2183_p7), %s261_s2, 4294967040  ;;  %p2184_p6 = scmp.eq.s32.totalorder %s1856_s4, 0 }
  0x72   : > { %1760 = dma.done.wait (%p2184_p6), [#allocation7], 512   ;;  %p2185_p2 = pmov %p2184_p6 }
  0x73   : > { %s278_s27 = scalar_lea.sflag [#allocation10], %s2016_s0  ;;  %s2029_s13 = scalar_lea.vmem [#allocation9], %s1406_s1 }
  0x74   : > { %1762 = vsyncadd (%p2185_p2), [#allocation7], 4294966784 }
  0x75   : > { %1764 = dma.done.wait (%p2183_p7), %s278_s27, 256  }
  0x76   : > { %1766 = vsyncadd (%p2183_p7), %s278_s27, 4294967040  ;;  %v331_v0 = vld [vmem:[%s264_s29 + $0x8] sm:$0xff]  ;;  %v330_v1 = vld [vmem:[%s264_s29] sm:$0xff]  ;;  %vm332_vm0 = vcmask 130048   ;;  %s313_s25 = sld [smem:[#allocation2]]  ;;  %s1410_s17 = sshll.u32 %s2016_s0, 5 }
  0x77   : > { %v368_v2 = vand.u32 4294901760, %v331_v0  ;;  %v371_v3 = vand.u32 4294901760, %v330_v1  ;;  %v316_v4 = vld [vmem:[#allocation8] sm:$0xff]  ;;  %v317_v5 = vld [vmem:[#allocation8 + $0x8] sm:$0xff]  ;;  %v314_v21 = vld [vmem:[#allocation6] sm:$0xff]  ;;  %s2098_s9 = scalar_lea.vmem [#allocation11], %s1410_s17 }
  0x78   : > { %v318_v6 = vmul.f32 0.5, %v316_v4  ;;  %v319_v7 = vmul.f32 0.5, %v317_v5  ;;  %v324_v18 = vld [vmem:[%s2029_s13] sm:$0xff]  ;;  %v325_v19 = vld [vmem:[%s2029_s13 + $0x8] sm:$0xff]  ;;  %s1436_s10 = sshll.u32 %s1856_s4, 9  ;;  %s1279_s6 = sshll.u32 %s2098_s9, 4  ;;  %s2110_s6 = int_to_ptr.vmem [resolvable:$true] %s1279_s6 }
  0x79   : > { %1461 = vmatprep.subr.mxu0 %v368_v2  ;;  %v456_v8 = vsub.f32 %v331_v0, %v368_v2  ;;  %v463_v9 = vsub.f32 %v330_v1, %v371_v3  ;;  %v315_v23 = vld [vmem:[#allocation6 + $0x8] sm:$0xff]  ;;  %s2108_s14 = scalar_lea.hbm %s2159_s5, %s1436_s10  ;;  %s1266_s4 = scalar_lea.sflag [#allocation5], %s2016_s0 }
  0x7a   : > { %1462 = vmatpush3.msra.mxu0 %v368_v2  ;;  %v320_v10 = vmul.f32 1.442695, %v318_v6  ;;  %v322_v11 = vmul.f32 1.442695, %v319_v7  ;;  %s1713_s15 = scalar_lea.vmem %s2110_s6, 512  ;;  %p2186_p11 = scmp.ne.s32.totalorder %s2177_s19, 0 }
  0x7b   : > { %v457_v12 = vand.u32 4294901760, %v456_v8  ;;  %1463 = vmatprep.subr.mxu0 %v371_v3  ;;  %v464_v13 = vand.u32 4294901760, %v463_v9  ;;  %p1714_p8 = scmp.ne.s32.totalorder %s2110_s6, %s1713_s15  ;;  %s1799_s7 = smov [#allocation11]  }
  0x7c   : > { %1464 = vmatpush3.msra.mxu0 %v371_v3  ;;  %1593 = vpow2.f32 %v320_v10  ;;  %s1717_s28 = sshll.u32 %s1799_s7, 4  ;;  %s1718_s28 = int_to_ptr.vmem [resolvable:$false] %s1717_s28 }
  0x7d   : > { %v458_v14 = vsub.f32 %v456_v8, %v457_v12  ;;  %v465_v15 = vsub.f32 %v463_v9, %v464_v13  ;;  %1595 = vpow2.f32 %v322_v11  ;;  %1475 = vmatprep.subr.mxu0 %v456_v8  ;;  %p1715_p13 = pnand %p1714_p8, %p2186_p11  ;;  %s1719_s8 = scalar_lea.vmem %s1718_s28, 1024 }
  0x7e   : > { %p1720_p5 = scmp.lt.s32.totalorder %s2110_s6, %s1718_s28  ;;  %p1721_p10 = scmp.lt.s32.totalorder %s1719_s8, %s1713_s15 }
  0x7f   : > { %v459_v16 = vand.u32 4294901760, %v458_v14  ;;  %v466_v17 = vand.u32 4294901760, %v465_v15  ;;  %p1716_p0 = pneg %p1715_p13 }
  0x80   : > { %p1722_p9 = por %p1721_p10, %p1720_p5 }
  0x81   : > { %1468 = vmatprep.subr.mxu1 %v459_v16 }
  0x82   : > { %1469 = vmatpush3.msra.mxu1 %v459_v16  ;;  %v1793_v16 = vmov 683565275   ;;  %p1723_p12 = pnand %p1722_p9, %p1716_p0 }
  0x83   : > { %1470 = vmatprep.subr.mxu1 %v466_v17 }
  0x84   : > { %1471 = vmatpush3.msra.mxu1 %v466_v17 }
  0x85   : > { %1482 = vmatprep.subr.mxu1 %v368_v2 }
  0x89   : > { %v1594_v20 = vpop.eup %1593 }
  0x8a   : > { %v1596_v22 = vpop.eup %1595  ;;  %v326_v24 = vmul.f32 %v1594_v20, %v324_v18 }
  0x8b   : > { %v327_v25 = vmul.f32 %v1596_v22, %v325_v19  ;;  %v1794_v19 = vmov 2475754826  }
  0x8c   : > { %v328_v26 = vadd.f32 %v326_v24, %v314_v21  ;;  %v1795_v21 = vmov 2131351028  }
  0x8d   : > { %v329_v27 = vadd.f32 %v327_v25, %v315_v23  ;;  %v1796_v23 = vmov 2102212464   ;;  %v1797_v25 = vmov 920167782  }
  0x8e   : > { %v334_v28 = vsel %vm332_vm0, %v328_v26, 0 }
  0x8f   : > { %v337_v29 = vsel %vm332_vm0, %v329_v27, 0  ;;  %v406_v30 = vand.u32 4294901760, %v334_v28 }
  0x90   : > { %v416_v31 = vand.u32 4294901760, %v337_v29 }
  0x91   : > { %v407_v32 = vsub.f32 %v334_v28, %v406_v30  ;;  %1472 = vmatprep.mubr.f32.mxu1 %v406_v30 }
  0x92   : > { %v417_v33 = vsub.f32 %v337_v29, %v416_v31  ;;  %1473 = vmatmul.mubr.f32.vlgmr.msra.gmra.mxu1 %v416_v31 }
  0x93   : > { %v408_v34 = vand.u32 4294901760, %v407_v32  ;;  %1483 = vmatpush3.msra.mxu1 %v368_v2 }
  0x94   : > { %v418_v35 = vand.u32 4294901760, %v417_v33  ;;  %1484 = vmatprep.subr.mxu1 %v371_v3 }
  0x95   : > { %v409_v36 = vsub.f32 %v407_v32, %v408_v34  ;;  %1485 = vmatpush3.msra.mxu1 %v371_v3  ;;  %1486 = vmatprep.mubr.f32.mxu1 %v408_v34 }
  0x96   : > { %v419_v37 = vsub.f32 %v417_v33, %v418_v35  ;;  %1487 = vmatmul.mubr.f32.vlgmr.msra.gmra.mxu1 %v418_v35  ;;  %1496 = vmatprep.subr.mxu1 %v368_v2 }
  0x97   : > { %v410_v38 = vand.u32 4294901760, %v409_v36  ;;  %1497 = vmatpush3.msra.mxu1 %v368_v2  ;;  %1500 = vmatprep.mubr.f32.mxu1 %v406_v30 }
  0x98   : > { %v420_v39 = vand.u32 4294901760, %v419_v37  ;;  %1498 = vmatprep.subr.mxu1 %v371_v3 }
  0x99   : > { %1465 = vmatprep.mubr.f32.mxu0 %v410_v38  ;;  %1499 = vmatpush3.msra.mxu1 %v371_v3 }
  0x9a   : > { %1466 = vmatmul.mubr.f32.vlgmr.msra.gmra.mxu0 %v420_v39  ;;  %1501 = vmatmul.mubr.f32.vlgmr.msra.gmra.mxu1 %v416_v31 }
  0x9b   : > { %1476 = vmatpush3.msra.mxu0 %v456_v8  ;;  %1479 = vmatprep.mubr.f32.mxu0 %v407_v32  ;;  %v1798_v32 = vmov 1326507024  }
  0x9c   : > { %1477 = vmatprep.subr.mxu0 %v463_v9 }
  0x9d   : > { %1478 = vmatpush3.msra.mxu0 %v463_v9 }
  0x9e   : > { %1489 = vmatprep.subr.mxu0 %v457_v12  ;;  %1480 = vmatmul.mubr.f32.vlgmr.msra.gmra.mxu0 %v417_v33 }
  0x9f   : > { %1490 = vmatpush3.msra.mxu0 %v457_v12  ;;  %1493 = vmatprep.mubr.f32.mxu0 %v406_v30 }
  0xa0   : > { %1491 = vmatprep.subr.mxu0 %v464_v13 }
  0xa1   : > { %1492 = vmatpush3.msra.mxu0 %v464_v13 }
  0xa2   : > { %1494 = vmatmul.mubr.f32.vlgmr.msra.gmra.mxu0 %v416_v31 }
 0x152   : > { %v1474_v40 = vpop.f32.mrf.mxu1 }
 0x154   : > { %v503_v41 = vpop.f32.mrf.mxu1 }
 0x156   : > { %v1488_v43 = vpop.f32.mrf.mxu1 }
 0x158   : > { %v667_v49 = vpop.f32.mrf.mxu1 }
 0x15a   : > { %v1467_v42 = vpop.f32.mrf.mxu0  ;;  %v1502_v56 = vpop.f32.mrf.mxu1 }
 0x15b   : > { %v510_v45 = vadd.f32 %v1474_v40, %v1467_v42 }
 0x15c   : > { %v412_v44 = vpop.f32.mrf.mxu0  ;;  %v831_v62 = vpop.f32.mrf.mxu1 }
 0x15d   : > { %v504_v47 = vadd.f32 %v503_v41, %v412_v44 }
 0x15e   : > { %v1481_v46 = vpop.f32.mrf.mxu0 }
 0x15f   : > { %v593_v48 = vadd.f32 %v1481_v46, %v510_v45 }
 0x160   : > { %v585_v50 = vpop.f32.mrf.mxu0 }
 0x161   : > { %v676_v51 = vadd.f32 %v1488_v43, %v593_v48  ;;  %v586_v52 = vadd.f32 %v585_v50, %v504_v47 }
 0x162   : > { %v1495_v53 = vpop.f32.mrf.mxu0 }
 0x163   : > { %v668_v54 = vadd.f32 %v667_v49, %v586_v52  ;;  %v759_v55 = vadd.f32 %v1495_v53, %v676_v51 }
 0x164   : > { %v752_v57 = vpop.f32.mrf.mxu0 }
 0x165   : > { %v2037_v58 = vadd.f32 %v1502_v56, %v759_v55  ;;  %v753_v59 = vadd.f32 %v752_v57, %v668_v54 }
 0x167   : > { %v944_v60 = vand.u32 2147483647, %v2037_v58  ;;  %v947_v61 = vand.u32 2139095040, %v2037_v58  ;;  %v2041_v63 = vadd.f32 %v831_v62, %v753_v59  ;;  %vm946_vm15 = vcmp.lt.s32.totalorder %v2037_v58, 0 }
 0x169   : > { %v948_v0 = vshrl.u32 %v947_v61, 23  ;;  %v951_v1 = vand.u32 8388607, %v944_v60  ;;  %v844_v2 = vand.u32 2139095040, %v2041_v63  ;;  %v841_v4 = vand.u32 2147483647, %v2041_v63 }
 0x16a   : > { %vm945_vm0 = vcmp.le.f32.partialorder %v944_v60, 0.7853982 }
 0x16b   : > { %v1415_v3 = vadd.s32 4294967169, %v948_v0  ;;  %v845_v5 = vshrl.u32 %v844_v2, 23  ;;  %v952_v7 = vor.u32 8388608, %v951_v1  ;;  %v848_v9 = vand.u32 8388607, %v841_v4 }
 0x16d   : > { %v954_v6 = vadd.s32 1, %v1415_v3  ;;  %v1411_v8 = vadd.s32 4294967169, %v845_v5  ;;  %v2049_v14 = vshll.u32 %v952_v7, 8  ;;  %v849_v18 = vor.u32 8388608, %v848_v9 }
 0x16f   : > { %vm955_vm1 = vcmp.gt.s32.totalorder %v954_v6, 0  ;;  %v851_v11 = vadd.s32 1, %v1411_v8  ;;  %v889_v51 = vshll.u32 %v849_v18, 8 }
 0x170   : > { %v956_v10 = vsel %vm955_vm1, %v954_v6, 0  ;;  %vm843_vm1 = vcmp.lt.s32.totalorder %v2041_v63, 0 }
 0x171   : > { %v957_v12 = vshrl.u32 %v956_v10, 5  ;;  %v958_v13 = vand.u32 31, %v956_v10  ;;  %vm852_vm2 = vcmp.gt.s32.totalorder %v851_v11, 0 }
 0x172   : > { %v853_v37 = vsel %vm852_vm2, %v851_v11, 0  ;;  %vm842_vm2 = vcmp.le.f32.partialorder %v841_v4, 0.7853982 }
 0x173   : > { %v959_v15 = vsub.s32 32, %v958_v13  ;;  %v961_v17 = vshll.u32 %v1793_v16, %v958_v13  ;;  %v964_v20 = vshll.u32 %v1794_v19, %v958_v13  ;;  %v967_v22 = vshll.u32 %v1795_v21, %v958_v13 }
 0x174   : > { %v970_v24 = vshll.u32 %v1796_v23, %v958_v13  ;;  %v973_v26 = vshll.u32 %v1797_v25, %v958_v13  ;;  %vm976_vm3 = vcmp.lt.s32.totalorder %v957_v12, 1  ;;  %vm978_vm4 = vcmp.lt.s32.totalorder %v957_v12, 3 }
 0x175   : > { %v962_v27 = vshrl.u32 %v1794_v19, %v959_v15  ;;  %v965_v28 = vshrl.u32 %v1795_v21, %v959_v15  ;;  %v968_v29 = vshrl.u32 %v1796_v23, %v959_v15  ;;  %v960_v30 = vshrl.u32 %v1793_v16, %v959_v15 }
 0x176   : > { %v971_v31 = vshrl.u32 %v1797_v25, %v959_v15  ;;  %v974_v33 = vshrl.u32 %v1798_v32, %v959_v15  ;;  %vm979_vm5 = vcmp.lt.s32.totalorder %v957_v12, 4  ;;  %v855_v40 = vand.u32 31, %v853_v37 }
 0x177   : > { %v963_v34 = vor.u32 %v962_v27, %v961_v17  ;;  %v966_v35 = vor.u32 %v965_v28, %v964_v20  ;;  %v969_v36 = vor.u32 %v968_v29, %v967_v22  ;;  %vm977_vm6 = vcmp.lt.s32.totalorder %v957_v12, 2 }
 0x178   : > { %v972_v38 = vor.u32 %v971_v31, %v970_v24  ;;  %v975_v39 = vor.u32 %v974_v33, %v973_v26  ;;  %v856_v48 = vsub.s32 32, %v855_v40  ;;  %v854_v55 = vshrl.u32 %v853_v37, 5 }
 0x179   : > { %v980_v41 = vsel %vm976_vm3, %v960_v30, %v963_v34  ;;  %v981_v42 = vsel %vm979_vm5, %v969_v36, 2102212464  ;;  %v984_v43 = vsel %vm976_vm3, %v963_v34, %v966_v35  ;;  %v988_v44 = vsel %vm976_vm3, %v966_v35, %v969_v36 }
 0x17a   : > { %v982_v45 = vsel %vm978_vm4, %v966_v35, %v981_v42  ;;  %v985_v46 = vsel %vm979_vm5, %v972_v38, 920167782  ;;  %v989_v47 = vsel %vm979_vm5, %v975_v39, 1326507024  ;;  %v858_v62 = vshll.u32 %v1793_v16, %v855_v40 }
 0x17b   : > { %v986_v49 = vsel %vm978_vm4, %v969_v36, %v985_v46  ;;  %v990_v50 = vsel %vm978_vm4, %v972_v38, %v989_v47  ;;  %v983_v52 = vsel %vm977_vm6, %v980_v41, %v982_v45  ;;  %v859_v0 = vshrl.u32 %v1794_v19, %v856_v48 }
 0x17c   : > { %v987_v53 = vsel %vm977_vm6, %v984_v43, %v986_v49  ;;  %v991_v54 = vsel %vm977_vm6, %v988_v44, %v990_v50  ;;  %v861_v1 = vshll.u32 %v1794_v19, %v855_v40  ;;  %v862_v2 = vshrl.u32 %v1795_v21, %v856_v48 }
 0x17d   : > { %v2061_v56 = vmul.u32.u64.low %v2049_v14, %v991_v54  ;;  %v2062_v57 = vmul.u32.u64.high %v2049_v14, %v991_v54, %v2061_v56  ;;  %v2065_v59 = vmul.u32.u64.low %v2049_v14, %v987_v53  ;;  %v2066_v61 = vmul.u32.u64.high %v2049_v14, %v987_v53, %v2065_v59 }
 0x17e   : > { %v864_v3 = vshll.u32 %v1795_v21, %v855_v40  ;;  %v865_v5 = vshrl.u32 %v1796_v23, %v856_v48  ;;  %v867_v6 = vshll.u32 %v1796_v23, %v855_v40  ;;  %v868_v7 = vshrl.u32 %v1797_v25, %v856_v48 }
 0x17f   : > { %v860_v8 = vor.u32 %v859_v0, %v858_v62  ;;  %v863_v9 = vor.u32 %v862_v2, %v861_v1  ;;  %v870_v10 = vshll.u32 %v1797_v25, %v855_v40  ;;  %v871_v11 = vshrl.u32 %v1798_v32, %v856_v48 }
 0x180   : > { %v999_v12 = vmul.u32 %v2049_v14, %v983_v52  ;;  %vm1001_vm7 = vc.u32 %v2062_v57, %v2065_v59  ;;  %v1002_v13 = vadd.s32 1, %v2066_v61  ;;  %v866_v15 = vor.u32 %v865_v5, %v864_v3 }
 0x181   : > { %v857_v17 = vshrl.u32 %v1793_v16, %v856_v48  ;;  %v869_v18 = vor.u32 %v868_v7, %v867_v6  ;;  %v872_v19 = vor.u32 %v871_v11, %v870_v10  ;;  %vm873_vm8 = vcmp.lt.s32.totalorder %v854_v55, 1 }
 0x182   : > { %v1003_v20 = vsel %vm1001_vm7, %v1002_v13, %v2066_v61  ;;  %vm875_vm9 = vcmp.lt.s32.totalorder %v854_v55, 3  ;;  %vm876_vm10 = vcmp.lt.s32.totalorder %v854_v55, 4  ;;  %v881_v21 = vsel %vm873_vm8, %v860_v8, %v863_v9 }
 0x183   : > { %v1004_v22 = vadd.s32 %v1003_v20, %v999_v12  ;;  %v878_v23 = vsel %vm876_vm10, %v866_v15, 2102212464  ;;  %v882_v24 = vsel %vm876_vm10, %v869_v18, 920167782  ;;  %v885_v14 = vsel %vm873_vm8, %v863_v9, %v866_v15 }
 0x184   : > { %vm874_vm11 = vcmp.lt.s32.totalorder %v854_v55, 2  ;;  %v877_v25 = vsel %vm873_vm8, %v857_v17, %v860_v8  ;;  %v883_v26 = vsel %vm875_vm9, %v866_v15, %v882_v24  ;;  %v886_v27 = vsel %vm876_vm10, %v872_v19, 1326507024 }
 0x185   : > { %v1005_v28 = vadd.s32 536870912, %v1004_v22  ;;  %v879_v29 = vsel %vm875_vm9, %v863_v9, %v878_v23  ;;  %v884_v30 = vsel %vm874_vm11, %v881_v21, %v883_v26  ;;  %v887_v16 = vsel %vm875_vm9, %v869_v18, %v886_v27 }
 0x186   : > { %v888_v31 = vsel %vm874_vm11, %v885_v14, %v887_v16  ;;  %v2076_v32 = vmul.u32.u64.low %v889_v51, %v884_v30  ;;  %v2077_v33 = vmul.u32.u64.high %v889_v51, %v884_v30, %v2076_v32  ;;  %v880_v37 = vsel %vm874_vm11, %v877_v25, %v879_v29 }
 0x187   : > { %v1006_v34 = vshrl.u32 %v1005_v28, 30  ;;  %v2079_v35 = vmul.u32.u64.low %v889_v51, %v888_v31  ;;  %v2080_v36 = vmul.u32.u64.high %v889_v51, %v888_v31, %v2079_v35  ;;  %v896_v41 = vmul.u32 %v889_v51, %v880_v37 }
 0x188   : > { %v899_v39 = vadd.s32 1, %v2077_v33  ;;  %v1000_v54 = vadd.s32 %v2065_v59, %v2062_v57  ;;  %vm1036_vm9 = vweird.f32 %v2037_v58 }
 0x189   : > { %v1007_v38 = vshll.u32 %v1006_v34, 30  ;;  %vm898_vm12 = vc.u32 %v2080_v36, %v2076_v32  ;;  %v897_v12 = vadd.s32 %v2076_v32, %v2080_v36  ;;  %v1030_v15 = vsub.s32 4, %v1006_v34 }
 0x18a   : > { %v900_v42 = vsel %vm898_vm12, %v899_v39, %v2077_v33 }
 0x18b   : > { %v1008_v40 = vsub.s32 %v1004_v22, %v1007_v38  ;;  %v901_v44 = vadd.s32 %v900_v42, %v896_v41  ;;  %v1031_v24 = vsel %vm946_vm15, %v1030_v15, %v1006_v34  ;;  %v1047_v38 = vstv %s313_s25 }
 0x18c   : > { %v1033_v27 = vsel %vm945_vm0, 0, %v1031_v24 }
 0x18d   : > { %v1010_v43 = vsub.s32 0, %v1008_v40  ;;  %v902_v46 = vadd.s32 536870912, %v901_v44  ;;  %v1249_v29 = vadd.s32 3, %v1033_v27  ;;  %v1037_v32 = vand.u32 3, %v1033_v27 }
 0x18f   : > { %v1416_v45 = vmin.u32 %v1010_v43, %v1008_v40  ;;  %v903_v48 = vshrl.u32 %v902_v46, 30  ;;  %v1250_v33 = vand.u32 3, %v1249_v29  ;;  %vm1042_vm3 = vcmp.eq.s32.totalorder %v1037_v32, 2 }
 0x190   : > { %vm1039_vm5 = vcmp.eq.s32.totalorder %v1037_v32, 0  ;;  %vm1038_vm7 = vcmp.lt.s32.totalorder %v1037_v32, 2 }
 0x191   : > { %v1012_v47 = vclz %v1416_v45  ;;  %v904_v50 = vshll.u32 %v903_v48, 30  ;;  %v927_v16 = vsub.s32 4, %v903_v48  ;;  %vm1255_vm4 = vcmp.eq.s32.totalorder %v1250_v33, 2 }
 0x192   : > { %vm1252_vm6 = vcmp.eq.s32.totalorder %v1250_v33, 0  ;;  %vm1251_vm8 = vcmp.lt.s32.totalorder %v1250_v33, 2 }
 0x193   : > { %v1417_v49 = vadd.s32 4294967294, %v1012_v47  ;;  %v905_v53 = vsub.s32 %v901_v44, %v904_v50  ;;  %v928_v34 = vsel %vm843_vm1, %v927_v16, %v903_v48 }
 0x195   : > { %vm1418_vm13 = vcmp.lt.s32.totalorder %v1417_v49, 0  ;;  %v907_v56 = vsub.s32 0, %v905_v53 }
 0x196   : > { %v1015_v52 = vsel %vm1418_vm13, 0, %v1417_v49 }
 0x197   : > { %v1016_v55 = vsub.s32 32, %v1015_v52  ;;  %v1020_v51 = vsub.s32 4294967266, %v1015_v52  ;;  %v1017_v61 = vshll.u32 %v1008_v40, %v1015_v52  ;;  %v1412_v1 = vmin.u32 %v907_v56, %v905_v53 }
 0x198   : > { %v930_v40 = vsel %vm842_vm2, 0, %v928_v34 }
 0x199   : > { %v1018_v62 = vshrl.u32 %v1000_v54, %v1016_v55  ;;  %v1021_v0 = vadd.s32 127, %v1020_v51  ;;  %v909_v5 = vclz %v1412_v1  ;;  %v1145_v46 = vadd.s32 3, %v930_v40 }
 0x19a   : > { %v934_v52 = vand.u32 3, %v930_v40 }
 0x19b   : > { %v1019_v2 = vor.u32 %v1018_v62, %v1017_v61  ;;  %v1022_v3 = vshll.u32 %v1021_v0, 23  ;;  %v1413_v7 = vadd.s32 4294967294, %v909_v5 }
 0x19c   : > { %vm939_vm10 = vcmp.eq.s32.totalorder %v934_v52, 2  ;;  %vm936_vm12 = vcmp.eq.s32.totalorder %v934_v52, 0 }
 0x19d   : > { %v1023_v6 = vor.u32 4788187, %v1022_v3  ;;  %v1026_v9 = vcvt.s32.f32 %v1019_v2  ;;  %vm1414_vm14 = vcmp.lt.s32.totalorder %v1413_v7, 0 }
 0x19e   : > { %v912_v11 = vsel %vm1414_vm14, 0, %v1413_v7  ;;  %vm935_vm14 = vcmp.lt.s32.totalorder %v934_v52, 2 }
 0x19f   : > { %v1024_v8 = vand.u32 2147483647, %v1023_v6  ;;  %v913_v57 = vsub.s32 32, %v912_v11  ;;  %v917_v59 = vsub.s32 4294967266, %v912_v11  ;;  %v914_v17 = vshll.u32 %v905_v53, %v912_v11 }
 0x1a0   : > { %v1146_v53 = vand.u32 3, %v1145_v46 }
 0x1a1   : > { %v1027_v10 = vmul.f32 %v1026_v9, %v1024_v8  ;;  %v915_v18 = vshrl.u32 %v897_v12, %v913_v57  ;;  %v918_v19 = vadd.s32 127, %v917_v59 }
 0x1a2   : > { %vm1151_vm11 = vcmp.eq.s32.totalorder %v1146_v53, 2  ;;  %vm1148_vm13 = vcmp.eq.s32.totalorder %v1146_v53, 0 }
 0x1a3   : > { %v1028_v13 = vxor.u32 2147483648, %v1027_v10  ;;  %v916_v22 = vor.u32 %v915_v18, %v914_v17  ;;  %v919_v23 = vshll.u32 %v918_v19, 23 }
 0x1a5   : > { %v1029_v20 = vsel %vm946_vm15, %v1028_v13, %v1027_v10  ;;  %v920_v14 = vor.u32 4788187, %v919_v23  ;;  %v923_v26 = vcvt.s32.f32 %v916_v22  ;;  %vm1147_vm15 = vcmp.lt.s32.totalorder %v1146_v53, 2 }
 0x1a6   : > { %v1032_v21 = vsel %vm945_vm0, %v2037_v58, %v1029_v20  ;;  %vm933_vm0 = vweird.f32 %v2041_v63 }
 0x1a7   : > { %1597 = vcosq.f32 %v1032_v21  ;;  %v921_v25 = vand.u32 2147483647, %v920_v14 }
 0x1a8   : > { %1599 = vsinq.f32 %v1032_v21 }
 0x1a9   : > { %v924_v28 = vmul.f32 %v923_v26, %v921_v25 }
 0x1ab   : > { %v925_v30 = vxor.u32 2147483648, %v924_v28 }
 0x1ad   : > { %v926_v60 = vsel %vm843_vm1, %v925_v30, %v924_v28 }
 0x1ae   : > { %v929_v31 = vsel %vm842_vm2, %v2041_v63, %v926_v60 }
 0x1af   : > { %1601 = vcosq.f32 %v929_v31 }
 0x1b0   : > { %1603 = vsinq.f32 %v929_v31 }
 0x1b4   : > { %v1598_v35 = vpop.eup %1597 }
 0x1b5   : > { %v1600_v36 = vpop.eup %1599  ;;  %v1043_v37 = vxor.u32 2147483648, %v1598_v35 }
 0x1b6   : > { %v1040_v39 = vxor.u32 2147483648, %v1600_v36 }
 0x1b7   : > { %v1044_v4 = vsel %vm1042_vm3, %v1043_v37, %v1600_v36  ;;  %v1257_v41 = vsel %vm1255_vm4, %v1043_v37, %v1600_v36 }
 0x1b8   : > { %v1041_v42 = vsel %vm1039_vm5, %v1598_v35, %v1040_v39  ;;  %v1254_v43 = vsel %vm1252_vm6, %v1598_v35, %v1040_v39 }
 0x1b9   : > { %v1045_v44 = vsel %vm1038_vm7, %v1041_v42, %v1044_v4  ;;  %v1258_v45 = vsel %vm1251_vm8, %v1254_v43, %v1257_v41 }
 0x1ba   : > { %v1046_v47 = vsel %vm1036_vm9, nan, %v1045_v44  ;;  %v1259_v48 = vsel %vm1036_vm9, nan, %v1258_v45 }
 0x1bb   : > { %v1049_v49 = vmul.f32 %v1047_v38, %v1046_v47  ;;  %v1261_v50 = vmul.f32 %v1259_v48, %v1047_v38 }
 0x1bc   : > { %v1602_v54 = vpop.eup %1601 }
 0x1bd   : > { %1051 = vst [vmem:[%s2098_s9 + $0x8] sm:$0xff] %v1049_v49  ;;  %1428 = vst [vmem:[%s2098_s9 + $0x18] sm:$0xff] %v1261_v50  ;;  %v1604_v55 = vpop.eup %1603  ;;  %v940_v58 = vxor.u32 2147483648, %v1602_v54 }
 0x1be   : > { %v937_v51 = vxor.u32 2147483648, %v1604_v55 }
 0x1bf   : > { %v941_v56 = vsel %vm939_vm10, %v940_v58, %v1604_v55  ;;  %v1153_v61 = vsel %vm1151_vm11, %v940_v58, %v1604_v55 }
 0x1c0   : > { %v938_v62 = vsel %vm936_vm12, %v1602_v54, %v937_v51  ;;  %v1150_v0 = vsel %vm1148_vm13, %v1602_v54, %v937_v51 }
 0x1c1   : > { %v942_v1 = vsel %vm935_vm14, %v938_v62, %v941_v56  ;;  %v1154_v2 = vsel %vm1147_vm15, %v1150_v0, %v1153_v61 }
 0x1c2   : > { %v943_v3 = vsel %vm933_vm0, nan, %v942_v1  ;;  %v1155_v5 = vsel %vm933_vm0, nan, %v1154_v2 }
 0x1c3   : > { %v1048_v6 = vmul.f32 %v1047_v38, %v943_v3  ;;  %v1260_v7 = vmul.f32 %v1155_v5, %v1047_v38 }
 0x1c5   : > { %1050 = vst [vmem:[%s2098_s9] sm:$0xff] %v1048_v6  ;;  %1427 = vst [vmem:[%s2098_s9 + $0x10] sm:$0xff] %v1260_v7 }
 0x1c6   : > { %1726 = shalt.err (!%p1723_p12)
}
 0x1c7   : > { %s1727_s12 = scalar_lea.hbm %s2108_s14, 512  ;;  %s1731_s2 = scalar_lea.hbm %s2159_s5, 2048 }
 0x1c8   : > { %p1728_p1 = scmp.ne.s32.totalorder %s2108_s14, %s1727_s12  ;;  %p1732_p7 = scmp.lt.s32.totalorder %s2108_s14, %s2159_s5 }
 0x1c9   : > { %p1733_p6 = scmp.lt.s32.totalorder %s1731_s2, %s1727_s12 }
 0x1ca   : > { %p1729_p4 = pnand %p1728_p1, %p2186_p11 }
 0x1cb   : > { %p1734_p2 = por %p1733_p6, %p1732_p7 }
 0x1cc   : > { %p1730_p3 = pneg %p1729_p4 }
 0x1ce   : > { %p1735_p8 = pnand %p1734_p2, %p1730_p3 }
 0x1d0   : > { %1738 = shalt.err (!%p1735_p8)
}
 0x1d1   : > { %s1800_s13 = smov 128   ;;  %s1801_s25 = smov 8  }
 0x1d2   : > { %1523 = dma.vmem_to_hbm [thread:$0]  (%p2186_p11), %s2110_s6, 512, %s2108_s14, %s1266_s4, %s1800_s13, %s1800_s13, %s1801_s25  }
 0x1d3 PF: > { %p1548_p13 = scmp.ge.s32.totalorder %s1785_s23, 2  ;;  %s1294_s17 = sand.u32 1, %s1773_s20  }
 0x1d4   : > { %p2187_p0 = scmp.ne.s32.totalorder %s2172_s26, 0  ;;  %s1295_s9 = scalar_lea.sflag [#allocation5], %s1294_s17 }
 0x1d6   : > { %p1540_p5 = pnand %p1548_p13, %p2187_p0 }
 0x1d8   : > { %p1541_p10 = pneg %p1540_p5 }
 0x1da   : > { %1768 = dma.done.wait (%p1541_p10), %s1295_s9, 512  }
 0x1db   : > { %1770 = vsyncadd (%p1541_p10), %s1295_s9, 4294966784  ;;  %p23_p9 = scmp.ge.s32.totalorder %s1912_s16, 6   ;;  %s2188_s20 = smov %s1777_s21 }
 0x1dc   : > { %s2189_s21 = smov %s1781_s22  ;;  %s2190_s22 = smov %s1928_s24 }
 0x1dd   : > { %s2191_s23 = smov %s1912_s16  ;;  %25 = sbr.rel (!%p23_p9) target bundleno = 13 (0xd), region = 107 }
 0x1e2   :  { %1300 = vsyncpa [#allocation4], 1 }
 0x1e3   :  { %1302 = vsyncpa [#allocation4 + $0x1], 1 }
 0x1e4   :  { %1303 = vsyncpa [#allocation7], 1 }
 0x1e5   :  { %1304 = vsyncpa [#allocation10], 1 }
 0x1e6   :  { %1306 = vsyncpa [#allocation10 + $0x1], 1 }
 0x1e7   :  { %1307 = vsyncpa [#allocation5], 1 }
 0x1e8   :  { %1309 = vsyncpa [#allocation5 + $0x1], 1 }

</bundles_post_ra>
